<compile_context>
chip_gen: v7x
topology: tpu7x:2x2x1
jax: 0.10.0
libtpu: 0.0.40
codegen_flags: <defaults>
</compile_context>

<pallas_src>
import functools

import jax
import jax.numpy as jnp
from jax.experimental import pallas as pl
from jax.experimental.pallas import tpu as pltpu


def _mha_kernel(x_ref, y_ref, wq_ref, bq_ref, wkv_ref, bkv_ref, wp_ref, bp_ref,
                out_ref, *rest, num_heads, head_dim, return_attn):
    # x_ref:   (1, tq, c)       query-row tile for this batch element
    # y_ref:   (1, m, c_ref)    full reference sequence (block index changes only
    #                           with the batch axis -> DMA'd once per batch)
    # wq_ref:  (c, c)           query projection, softmax scale pre-folded
    # bq_ref:  (1, c)           query bias, scale pre-folded
    # wkv_ref: (c_ref, 2c)      fused key/value projection
    # bkv_ref: (1, 2c)
    # wp_ref:  (c, c)           output projection
    # bp_ref:  (1, c)
    # out_ref: (1, tq, c)
    # attn_ref:(1, H, tq, m)    lane-dense per-head probabilities (optional)
    # kv_ref:  (m, 2c)  VMEM    K/V cache, valid for the current batch element
    # o_ref:   (tq, c)  VMEM    head-major attention output (pre-projection)
    if return_attn:
        attn_ref, kv_ref, o_ref = rest
    else:
        attn_ref = None
        kv_ref, o_ref = rest

    cdt = x_ref.dtype
    c = num_heads * head_dim
    qi = pl.program_id(1)

    # K/V projection depends only on the batch element: compute it once (first
    # query tile of each batch) and cache it in VMEM for the remaining tiles.
    @pl.when(qi == 0)
    def _():
        kv = jnp.dot(y_ref[0], wkv_ref[...],
                     preferred_element_type=jnp.float32) + bkv_ref[...]
        kv_ref[...] = kv.astype(kv_ref.dtype)

    # Full-width (K = c) query projection; softmax scale folded into wq/bq.
    q_all = (jnp.dot(x_ref[0], wq_ref[...],
                     preferred_element_type=jnp.float32)
             + bq_ref[...]).astype(cdt)                               # (tq, c)

    for h in range(num_heads):                    # static unroll (small H)
        lo = h * head_dim
        hi = lo + head_dim
        q_h = q_all[:, lo:hi]                                         # (tq, d)
        k_h = kv_ref[:, lo:hi]                                        # (m, d)
        v_h = kv_ref[:, c + lo:c + hi]                                # (m, d)

        # scores = q_h @ k_h.T  (scale already folded into q).
        s = jax.lax.dot_general(q_h, k_h, (((1,), (1,)), ((), ())),
                                preferred_element_type=jnp.float32)   # (tq, m)
        # Numerically-stable softmax over m; exact reciprocal keeps the stored
        # probabilities at parity with the reference softmax (one column only).
        s = s - jnp.max(s, axis=-1, keepdims=True)
        p = jnp.exp(s)
        inv = pl.reciprocal(jnp.sum(p, axis=-1, keepdims=True), approx=False)
        probs = p * inv                                               # (tq, m) f32

        if return_attn:
            # Lane-dense store: attn laid out (b, h, n, m) -> m on the lane axis.
            attn_ref[0, h] = probs.astype(attn_ref.dtype)

        o_h = jnp.dot(probs.astype(cdt), v_h,
                      preferred_element_type=jnp.float32)             # (tq, d)
        o_ref[:, lo:hi] = o_h.astype(o_ref.dtype)

    # Single full-K (= c) output projection instead of per-head K = d matmuls.
    out = jnp.dot(o_ref[...], wp_ref[...],
                  preferred_element_type=jnp.float32) + bp_ref[...]
    out_ref[0] = out.astype(out_ref.dtype)


def _pick_q_tile(n, target):
    """Largest query tile <= target that divides n (multiple of 8 if tiled)."""
    if n <= target:
        return n
    for t in range(target, 7, -1):
        if n % t == 0 and t % 8 == 0:
            return t
    return n


def _vmem_budget_bytes():
    # Generation-aware scoped-VMEM limit: ~3/4 of physical VMEM
    # (v5e/v6e: 128 MiB, v7x: 64 MiB), capped at 100 MiB; conservative
    # fallback if the query is unavailable.
    try:
        cap = int(pltpu.get_tpu_info().vmem_capacity_bytes)
        return min(cap * 3 // 4, 100 * 1024 * 1024)
    except Exception:
        return 48 * 1024 * 1024


def multi_head_attention(x, params, y=None, *, num_heads, return_attn=True,
                         attn_dtype=jnp.float32, q_tile=None, interpret=False):
    """Pallas implementation of MultiHeadAttention.forward (mask=None).

    Returns (out, attn) with attn laid out lane-dense as (b, num_heads, n, m);
    the PyTorch (b, n, m, h) layout is jnp.transpose(attn, (0, 2, 3, 1)).
    With return_attn=False the attention writeback (the dominant HBM traffic)
    is skipped and only `out` is returned.  attn_dtype=jnp.bfloat16 halves the
    attention writeback bytes when it is kept.
    """
    if y is None:
        y = x
    b, n, c = x.shape
    _, m, c_ref = y.shape
    assert c % num_heads == 0, (c, num_heads)
    d = c // num_heads
    scale = d ** (-0.5)

    wq, bq, wkv, bkv, wp, bp = params

    # Fold the softmax scale into the query projection (done once, wrapper-side).
    wq_s = (wq * scale).astype(x.dtype)
    bq_s = (jnp.reshape(bq, (1, c)) * scale).astype(x.dtype)
    bkv2 = jnp.reshape(bkv, (1, 2 * c)).astype(y.dtype)
    bp2 = jnp.reshape(bp, (1, c)).astype(x.dtype)

    vmem_budget = _vmem_budget_bytes()
    # Larger query tiles on 128 MiB parts (v5e/v6e), smaller on v7x (64 MiB).
    target = 512 if vmem_budget >= 72 * 1024 * 1024 else 256
    tq = q_tile if q_tile is not None else _pick_q_tile(n, target)
    assert n % tq == 0, (n, tq)
    grid = (b, n // tq)

    kernel = functools.partial(_mha_kernel, num_heads=num_heads, head_dim=d,
                               return_attn=return_attn)

    in_specs = [
        pl.BlockSpec((1, tq, c), lambda bi, qi: (bi, qi, 0)),        # x tile
        pl.BlockSpec((1, m, c_ref), lambda bi, qi: (bi, 0, 0)),      # y (per-b)
        pl.BlockSpec((c, c), lambda bi, qi: (0, 0)),                 # wq * scale
        pl.BlockSpec((1, c), lambda bi, qi: (0, 0)),                 # bq * scale
        pl.BlockSpec((c_ref, 2 * c), lambda bi, qi: (0, 0)),         # wkv
        pl.BlockSpec((1, 2 * c), lambda bi, qi: (0, 0)),             # bkv
        pl.BlockSpec((c, c), lambda bi, qi: (0, 0)),                 # wp
        pl.BlockSpec((1, c), lambda bi, qi: (0, 0)),                 # bp
    ]
    out_specs = [pl.BlockSpec((1, tq, c), lambda bi, qi: (bi, qi, 0))]
    out_shape = [jax.ShapeDtypeStruct((b, n, c), x.dtype)]
    if return_attn:
        out_specs.append(
            pl.BlockSpec((1, num_heads, tq, m), lambda bi, qi: (bi, 0, qi, 0)))
        out_shape.append(
            jax.ShapeDtypeStruct((b, num_heads, n, m), attn_dtype))

    result = pl.pallas_call(
        kernel,
        grid_spec=pltpu.PrefetchScalarGridSpec(
            num_scalar_prefetch=0,
            grid=grid,
            in_specs=in_specs,
            out_specs=tuple(out_specs),
            scratch_shapes=[
                pltpu.VMEM((m, 2 * c), x.dtype),   # cached K/V for current batch
                pltpu.VMEM((tq, c), x.dtype),      # head-major pre-projection out
            ],
        ),
        out_shape=tuple(out_shape),
        compiler_params=pltpu.CompilerParams(
            # Batch axis shards across TensorCores (v7x); the query-tile axis is
            # "arbitrary" so the per-batch K/V cache (written at qi == 0) is
            # reused sequentially by the remaining query tiles of that batch.
            dimension_semantics=("parallel", "arbitrary"),
            vmem_limit_bytes=vmem_budget,
        ),
        interpret=interpret,
    )(x, y, wq_s, bq_s, wkv, bkv2, wp, bp2)

    if return_attn:
        out, attn = result
        return out, attn
    return result[0]


def mha_reference(x, params, y=None, *, num_heads):
    """Pure-JAX reference mirroring the PyTorch einsum formulation (attn: bnmh)."""
    if y is None:
        y = x
    b, n, c = x.shape
    _, m, _ = y.shape
    d = c // num_heads
    scale = d ** (-0.5)
    wq, bq, wkv, bkv, wp, bp = params
    q = (x @ wq + bq).reshape(b, n, num_heads, d)
    kv = (y @ wkv + bkv).reshape(b, m, 2, num_heads, d)
    k, v = kv[:, :, 0], kv[:, :, 1]
    attn = jnp.einsum('bnhd,bmhd->bnmh', q, k) * scale
    attn = jax.nn.softmax(attn, axis=2)
    out = jnp.einsum('bnmh,bmhd->bnhd', attn, v).reshape(b, n, c)
    out = out @ wp + bp
    return out, attn


def _check(out, attn_bhnm, ref_out, ref_attn_bnmh):
    ref_attn = jnp.transpose(ref_attn_bnmh, (0, 3, 1, 2))
    # Tolerance covers MXU accumulation-order differences and the wrapper-side
    # folding of the softmax scale into wq/bq (the reciprocal is exact now).
    assert out.shape == ref_out.shape and attn_bhnm.shape == ref_attn.shape
    assert jnp.allclose(out, ref_out, rtol=2e-2, atol=2e-3), \
        float(jnp.max(jnp.abs(out - ref_out)))
    assert jnp.allclose(attn_bhnm, ref_attn, rtol=2e-2, atol=2e-3), \
        float(jnp.max(jnp.abs(attn_bhnm - ref_attn)))


if __name__ == "__main__":
    B, N, C = 2, 8, 32          # batch, seq, dim_self
    NUM_HEADS = 4

    key = jax.random.PRNGKey(0)
    (kx, kq, kbq, kkv, kbkv, kp, kbp,
     ky, kkv2, kbkv2) = jax.random.split(key, 10)

    # ---- self-attention (y = x, dim_ref = dim_self) ----
    x = jax.random.normal(kx, (B, N, C), dtype=jnp.float32)
    # Parameters stored as (in_features, out_features) so the kernel does x @ W + b.
    wq = 0.1 * jax.random.normal(kq, (C, C), dtype=jnp.float32)
    bq = 0.1 * jax.random.normal(kbq, (1, C), dtype=jnp.float32)
    wkv = 0.1 * jax.random.normal(kkv, (C, 2 * C), dtype=jnp.float32)
    bkv = 0.1 * jax.random.normal(kbkv, (1, 2 * C), dtype=jnp.float32)
    wp = 0.1 * jax.random.normal(kp, (C, C), dtype=jnp.float32)
    bp = 0.1 * jax.random.normal(kbp, (1, C), dtype=jnp.float32)
    params = (wq, bq, wkv, bkv, wp, bp)

    out, attn = multi_head_attention(x, params, num_heads=NUM_HEADS)
    out = jax.block_until_ready(out)
    attn = jax.block_until_ready(attn)
    assert out.shape == (B, N, C) and attn.shape == (B, NUM_HEADS, N, N)

    ref_out, ref_attn = mha_reference(x, params, num_heads=NUM_HEADS)
    _check(out, attn, ref_out, ref_attn)

    # ---- fast path: attention probabilities not materialized ----
    out_fast = multi_head_attention(x, params, num_heads=NUM_HEADS,
                                    return_attn=False)
    out_fast = jax.block_until_ready(out_fast)
    assert out_fast.shape == (B, N, C)
    assert jnp.allclose(out_fast, ref_out, rtol=2e-2, atol=2e-3), \
        float(jnp.max(jnp.abs(out_fast - ref_out)))

    # ---- cross-attention (dim_ref != dim_self, m != n) ----
    M, C_REF = 16, 24
    y = jax.random.normal(ky, (B, M, C_REF), dtype=jnp.float32)
    wkv_x = 0.1 * jax.random.normal(kkv2, (C_REF, 2 * C), dtype=jnp.float32)
    bkv_x = 0.1 * jax.random.normal(kbkv2, (1, 2 * C), dtype=jnp.float32)
    params_x = (wq, bq, wkv_x, bkv_x, wp, bp)

    out2, attn2 = multi_head_attention(x, params_x, y, num_heads=NUM_HEADS)
    out2 = jax.block_until_ready(out2)
    attn2 = jax.block_until_ready(attn2)
    assert out2.shape == (B, N, C) and attn2.shape == (B, NUM_HEADS, N, M)

    ref_out2, ref_attn2 = mha_reference(x, params_x, y, num_heads=NUM_HEADS)
    _check(out2, attn2, ref_out2, ref_attn2)

    print("KERNEL_OK")
</pallas_src>

<mosaic_0001>
module attributes {stable_mosaic.version = 11 : i64} {
  func.func @_mha_kernel(%arg0: i32, %arg1: i32, %arg2: memref<1x8x32xf32, #tpu.memory_space<vmem>>, %arg3: memref<1x8x32xf32, #tpu.memory_space<vmem>>, %arg4: memref<32x32xf32, #tpu.memory_space<vmem>>, %arg5: memref<1x32xf32, #tpu.memory_space<vmem>>, %arg6: memref<32x64xf32, #tpu.memory_space<vmem>>, %arg7: memref<1x64xf32, #tpu.memory_space<vmem>>, %arg8: memref<32x32xf32, #tpu.memory_space<vmem>>, %arg9: memref<1x32xf32, #tpu.memory_space<vmem>>, %arg10: memref<1x8x32xf32, #tpu.memory_space<vmem>>, %arg11: memref<1x4x8x8xf32, #tpu.memory_space<vmem>>, %arg12: memref<8x64xf32, #tpu.memory_space<vmem>>, %arg13: memref<8x32xf32, #tpu.memory_space<vmem>>) attributes {dimension_semantics = [#tpu.dimension_semantics<parallel>, #tpu.dimension_semantics<arbitrary>], iteration_bounds = array<i64: 2, 1>, scalar_prefetch = 0 : i64, scratch_operands = 2 : i64, tpu.core_type = #tpu.core_type<tc>, window_params = [{transform_indices = @transform_0, window_bounds = array<i64: 1, 8, 32>}, {transform_indices = @transform_1, window_bounds = array<i64: 1, 8, 32>}, {pipeline_mode = #tpu.pipeline_mode<synchronous>, transform_indices = @transform_2, window_bounds = array<i64: 32, 32>}, {pipeline_mode = #tpu.pipeline_mode<synchronous>, transform_indices = @transform_3, window_bounds = array<i64: 1, 32>}, {pipeline_mode = #tpu.pipeline_mode<synchronous>, transform_indices = @transform_4, window_bounds = array<i64: 32, 64>}, {pipeline_mode = #tpu.pipeline_mode<synchronous>, transform_indices = @transform_5, window_bounds = array<i64: 1, 64>}, {pipeline_mode = #tpu.pipeline_mode<synchronous>, transform_indices = @transform_6, window_bounds = array<i64: 32, 32>}, {pipeline_mode = #tpu.pipeline_mode<synchronous>, transform_indices = @transform_7, window_bounds = array<i64: 1, 32>}, {transform_indices = @transform_8, window_bounds = array<i64: 1, 8, 32>}, {transform_indices = @transform_9, window_bounds = array<i64: 1, 4, 8, 8>}]} {
    %c0_i32 = arith.constant 0 : i32
    %0 = arith.cmpi eq, %arg1, %c0_i32 : i32
    %1 = arith.extui %0 : i1 to i32
    %c0_i32_0 = arith.constant 0 : i32
    %2 = arith.cmpi ne, %1, %c0_i32_0 : i32
    scf.if %2 {
      %c0_63 = arith.constant 0 : index
      %c0_64 = arith.constant 0 : index
      %c0_65 = arith.constant 0 : index
      %95 = vector.load %arg3[%c0_63, %c0_64, %c0_65] : memref<1x8x32xf32, #tpu.memory_space<vmem>>, vector<1x8x32xf32>
      %96 = vector.shape_cast %95 : vector<1x8x32xf32> to vector<8x32xf32>
      %c0_66 = arith.constant 0 : index
      %c0_67 = arith.constant 0 : index
      %97 = vector.load %arg6[%c0_66, %c0_67] : memref<32x64xf32, #tpu.memory_space<vmem>>, vector<32x64xf32>
      %cst_68 = arith.constant dense<0.000000e+00> : vector<8x64xf32>
      %98 = tpu.matmul %96, %97, %cst_68 {dimension_numbers = #tpu.dot_dimension_numbers<[1], [0], [0], [1], [0, 0, 1, 1], [], []>} : vector<8x32xf32>, vector<32x64xf32>, vector<8x64xf32> -> vector<8x64xf32>
      %c0_69 = arith.constant 0 : index
      %c0_70 = arith.constant 0 : index
      %99 = vector.load %arg7[%c0_69, %c0_70] : memref<1x64xf32, #tpu.memory_space<vmem>>, vector<1x64xf32>
      %100 = vector.broadcast %99 : vector<1x64xf32> to vector<8x64xf32>
      %101 = arith.addf %98, %100 : vector<8x64xf32>
      %c0_71 = arith.constant 0 : index
      %c0_72 = arith.constant 0 : index
      %102 = vector.load %arg12[%c0_71, %c0_72] : memref<8x64xf32, #tpu.memory_space<vmem>>, vector<8x64xf32>
      tpu.vector_store %arg12[%c0_71, %c0_72], %101 {strides = array<i32>} : memref<8x64xf32, #tpu.memory_space<vmem>>, vector<8x64xf32>,
    } else {
    }
    %c0 = arith.constant 0 : index
    %c0_1 = arith.constant 0 : index
    %c0_2 = arith.constant 0 : index
    %3 = vector.load %arg2[%c0, %c0_1, %c0_2] : memref<1x8x32xf32, #tpu.memory_space<vmem>>, vector<1x8x32xf32>
    %4 = vector.shape_cast %3 : vector<1x8x32xf32> to vector<8x32xf32>
    %c0_3 = arith.constant 0 : index
    %c0_4 = arith.constant 0 : index
    %5 = vector.load %arg4[%c0_3, %c0_4] : memref<32x32xf32, #tpu.memory_space<vmem>>, vector<32x32xf32>
    %cst = arith.constant dense<0.000000e+00> : vector<8x32xf32>
    %6 = tpu.matmul %4, %5, %cst {dimension_numbers = #tpu.dot_dimension_numbers<[1], [0], [0], [1], [0, 0, 1, 1], [], []>} : vector<8x32xf32>, vector<32x32xf32>, vector<8x32xf32> -> vector<8x32xf32>
    %c0_5 = arith.constant 0 : index
    %c0_6 = arith.constant 0 : index
    %7 = vector.load %arg5[%c0_5, %c0_6] : memref<1x32xf32, #tpu.memory_space<vmem>>, vector<1x32xf32>
    %8 = vector.broadcast %7 : vector<1x32xf32> to vector<8x32xf32>
    %9 = arith.addf %6, %8 : vector<8x32xf32>
    %10 = vector.extract_strided_slice %9 {offsets = [0, 0], sizes = [8, 8], strides = [1, 1]} : vector<8x32xf32> to vector<8x8xf32>
    %c0_7 = arith.constant 0 : index
    %c0_8 = arith.constant 0 : index
    %11 = vector.load %arg12[%c0_7, %c0_8] : memref<8x64xf32, #tpu.memory_space<vmem>>, vector<8x8xf32>
    %c0_9 = arith.constant 0 : index
    %c32 = arith.constant 32 : index
    %12 = vector.load %arg12[%c0_9, %c32] : memref<8x64xf32, #tpu.memory_space<vmem>>, vector<8x8xf32>
    %cst_10 = arith.constant dense<0.000000e+00> : vector<8x8xf32>
    %13 = tpu.matmul %10, %11, %cst_10 {dimension_numbers = #tpu.dot_dimension_numbers<[1], [1], [0], [0], [0, 0, 1, 0], [], []>} : vector<8x8xf32>, vector<8x8xf32>, vector<8x8xf32> -> vector<8x8xf32>
    %cst_11 = arith.constant dense<0xFF800000> : vector<8xf32>
    %14 = vector.multi_reduction <maximumf>, %13, %cst_11 [1] : vector<8x8xf32> to vector<8xf32>
    %15 = vector.shape_cast %14 : vector<8xf32> to vector<8x1xf32>
    %16 = vector.broadcast %15 : vector<8x1xf32> to vector<8x8xf32>
    %17 = arith.subf %13, %16 : vector<8x8xf32>
    %18 = math.exp %17 : vector<8x8xf32>
    %cst_12 = arith.constant dense<0.000000e+00> : vector<8xf32>
    %19 = vector.multi_reduction <add>, %18, %cst_12 [1] : vector<8x8xf32> to vector<8xf32>
    %20 = vector.shape_cast %19 : vector<8xf32> to vector<8x1xf32>
    %21 = tpu.reciprocal %20 : vector<8x1xf32> -> vector<8x1xf32>
    %22 = vector.broadcast %21 : vector<8x1xf32> to vector<8x8xf32>
    %23 = arith.mulf %18, %22 : vector<8x8xf32>
    %c0_13 = arith.constant 0 : index
    %c0_14 = arith.constant 0 : index
    %c0_15 = arith.constant 0 : index
    %c0_16 = arith.constant 0 : index
    %24 = vector.load %arg11[%c0_13, %c0_14, %c0_15, %c0_16] : memref<1x4x8x8xf32, #tpu.memory_space<vmem>>, vector<1x1x8x8xf32>
    %25 = vector.shape_cast %24 : vector<1x1x8x8xf32> to vector<8x8xf32>
    %26 = vector.shape_cast %23 : vector<8x8xf32> to vector<1x1x8x8xf32>
    tpu.vector_store %arg11[%c0_13, %c0_14, %c0_15, %c0_16], %26 {strides = array<i32>} : memref<1x4x8x8xf32, #tpu.memory_space<vmem>>, vector<1x1x8x8xf32>,
    %cst_17 = arith.constant dense<0.000000e+00> : vector<8x8xf32>
    %27 = tpu.matmul %23, %12, %cst_17 {dimension_numbers = #tpu.dot_dimension_numbers<[1], [0], [0], [1], [0, 0, 1, 1], [], []>} : vector<8x8xf32>, vector<8x8xf32>, vector<8x8xf32> -> vector<8x8xf32>
    %c0_18 = arith.constant 0 : index
    %c0_19 = arith.constant 0 : index
    %28 = vector.load %arg13[%c0_18, %c0_19] : memref<8x32xf32, #tpu.memory_space<vmem>>, vector<8x8xf32>
    tpu.vector_store %arg13[%c0_18, %c0_19], %27 {strides = array<i32>} : memref<8x32xf32, #tpu.memory_space<vmem>>, vector<8x8xf32>,
    %29 = vector.extract_strided_slice %9 {offsets = [0, 8], sizes = [8, 8], strides = [1, 1]} : vector<8x32xf32> to vector<8x8xf32>
    %c0_20 = arith.constant 0 : index
    %c8 = arith.constant 8 : index
    %30 = vector.load %arg12[%c0_20, %c8] : memref<8x64xf32, #tpu.memory_space<vmem>>, vector<8x8xf32>
    %c0_21 = arith.constant 0 : index
    %c40 = arith.constant 40 : index
    %31 = vector.load %arg12[%c0_21, %c40] : memref<8x64xf32, #tpu.memory_space<vmem>>, vector<8x8xf32>
    %cst_22 = arith.constant dense<0.000000e+00> : vector<8x8xf32>
    %32 = tpu.matmul %29, %30, %cst_22 {dimension_numbers = #tpu.dot_dimension_numbers<[1], [1], [0], [0], [0, 0, 1, 0], [], []>} : vector<8x8xf32>, vector<8x8xf32>, vector<8x8xf32> -> vector<8x8xf32>
    %cst_23 = arith.constant dense<0xFF800000> : vector<8xf32>
    %33 = vector.multi_reduction <maximumf>, %32, %cst_23 [1] : vector<8x8xf32> to vector<8xf32>
    %34 = vector.shape_cast %33 : vector<8xf32> to vector<8x1xf32>
    %35 = vector.broadcast %34 : vector<8x1xf32> to vector<8x8xf32>
    %36 = arith.subf %32, %35 : vector<8x8xf32>
    %37 = math.exp %36 : vector<8x8xf32>
    %cst_24 = arith.constant dense<0.000000e+00> : vector<8xf32>
    %38 = vector.multi_reduction <add>, %37, %cst_24 [1] : vector<8x8xf32> to vector<8xf32>
    %39 = vector.shape_cast %38 : vector<8xf32> to vector<8x1xf32>
    %40 = tpu.reciprocal %39 : vector<8x1xf32> -> vector<8x1xf32>
    %41 = vector.broadcast %40 : vector<8x1xf32> to vector<8x8xf32>
    %42 = arith.mulf %37, %41 : vector<8x8xf32>
    %c0_25 = arith.constant 0 : index
    %c1 = arith.constant 1 : index
    %c0_26 = arith.constant 0 : index
    %c0_27 = arith.constant 0 : index
    %43 = vector.load %arg11[%c0_25, %c1, %c0_26, %c0_27] : memref<1x4x8x8xf32, #tpu.memory_space<vmem>>, vector<1x1x8x8xf32>
    %44 = vector.shape_cast %43 : vector<1x1x8x8xf32> to vector<8x8xf32>
    %45 = vector.shape_cast %42 : vector<8x8xf32> to vector<1x1x8x8xf32>
    tpu.vector_store %arg11[%c0_25, %c1, %c0_26, %c0_27], %45 {strides = array<i32>} : memref<1x4x8x8xf32, #tpu.memory_space<vmem>>, vector<1x1x8x8xf32>,
    %cst_28 = arith.constant dense<0.000000e+00> : vector<8x8xf32>
    %46 = tpu.matmul %42, %31, %cst_28 {dimension_numbers = #tpu.dot_dimension_numbers<[1], [0], [0], [1], [0, 0, 1, 1], [], []>} : vector<8x8xf32>, vector<8x8xf32>, vector<8x8xf32> -> vector<8x8xf32>
    %c0_29 = arith.constant 0 : index
    %c8_30 = arith.constant 8 : index
    %47 = vector.load %arg13[%c0_29, %c8_30] : memref<8x32xf32, #tpu.memory_space<vmem>>, vector<8x8xf32>
    tpu.vector_store %arg13[%c0_29, %c8_30], %46 {strides = array<i32>} : memref<8x32xf32, #tpu.memory_space<vmem>>, vector<8x8xf32>,
    %48 = vector.extract_strided_slice %9 {offsets = [0, 16], sizes = [8, 8], strides = [1, 1]} : vector<8x32xf32> to vector<8x8xf32>
    %c0_31 = arith.constant 0 : index
    %c16 = arith.constant 16 : index
    %49 = vector.load %arg12[%c0_31, %c16] : memref<8x64xf32, #tpu.memory_space<vmem>>, vector<8x8xf32>
    %c0_32 = arith.constant 0 : index
    %c48 = arith.constant 48 : index
    %50 = vector.load %arg12[%c0_32, %c48] : memref<8x64xf32, #tpu.memory_space<vmem>>, vector<8x8xf32>
    %cst_33 = arith.constant dense<0.000000e+00> : vector<8x8xf32>
    %51 = tpu.matmul %48, %49, %cst_33 {dimension_numbers = #tpu.dot_dimension_numbers<[1], [1], [0], [0], [0, 0, 1, 0], [], []>} : vector<8x8xf32>, vector<8x8xf32>, vector<8x8xf32> -> vector<8x8xf32>
    %cst_34 = arith.constant dense<0xFF800000> : vector<8xf32>
    %52 = vector.multi_reduction <maximumf>, %51, %cst_34 [1] : vector<8x8xf32> to vector<8xf32>
    %53 = vector.shape_cast %52 : vector<8xf32> to vector<8x1xf32>
    %54 = vector.broadcast %53 : vector<8x1xf32> to vector<8x8xf32>
    %55 = arith.subf %51, %54 : vector<8x8xf32>
    %56 = math.exp %55 : vector<8x8xf32>
    %cst_35 = arith.constant dense<0.000000e+00> : vector<8xf32>
    %57 = vector.multi_reduction <add>, %56, %cst_35 [1] : vector<8x8xf32> to vector<8xf32>
    %58 = vector.shape_cast %57 : vector<8xf32> to vector<8x1xf32>
    %59 = tpu.reciprocal %58 : vector<8x1xf32> -> vector<8x1xf32>
    %60 = vector.broadcast %59 : vector<8x1xf32> to vector<8x8xf32>
    %61 = arith.mulf %56, %60 : vector<8x8xf32>
    %c0_36 = arith.constant 0 : index
    %c2 = arith.constant 2 : index
    %c0_37 = arith.constant 0 : index
    %c0_38 = arith.constant 0 : index
    %62 = vector.load %arg11[%c0_36, %c2, %c0_37, %c0_38] : memref<1x4x8x8xf32, #tpu.memory_space<vmem>>, vector<1x1x8x8xf32>
    %63 = vector.shape_cast %62 : vector<1x1x8x8xf32> to vector<8x8xf32>
    %64 = vector.shape_cast %61 : vector<8x8xf32> to vector<1x1x8x8xf32>
    tpu.vector_store %arg11[%c0_36, %c2, %c0_37, %c0_38], %64 {strides = array<i32>} : memref<1x4x8x8xf32, #tpu.memory_space<vmem>>, vector<1x1x8x8xf32>,
    %cst_39 = arith.constant dense<0.000000e+00> : vector<8x8xf32>
    %65 = tpu.matmul %61, %50, %cst_39 {dimension_numbers = #tpu.dot_dimension_numbers<[1], [0], [0], [1], [0, 0, 1, 1], [], []>} : vector<8x8xf32>, vector<8x8xf32>, vector<8x8xf32> -> vector<8x8xf32>
    %c0_40 = arith.constant 0 : index
    %c16_41 = arith.constant 16 : index
    %66 = vector.load %arg13[%c0_40, %c16_41] : memref<8x32xf32, #tpu.memory_space<vmem>>, vector<8x8xf32>
    tpu.vector_store %arg13[%c0_40, %c16_41], %65 {strides = array<i32>} : memref<8x32xf32, #tpu.memory_space<vmem>>, vector<8x8xf32>,
    %67 = vector.extract_strided_slice %9 {offsets = [0, 24], sizes = [8, 8], strides = [1, 1]} : vector<8x32xf32> to vector<8x8xf32>
    %c0_42 = arith.constant 0 : index
    %c24 = arith.constant 24 : index
    %68 = vector.load %arg12[%c0_42, %c24] : memref<8x64xf32, #tpu.memory_space<vmem>>, vector<8x8xf32>
    %c0_43 = arith.constant 0 : index
    %c56 = arith.constant 56 : index
    %69 = vector.load %arg12[%c0_43, %c56] : memref<8x64xf32, #tpu.memory_space<vmem>>, vector<8x8xf32>
    %cst_44 = arith.constant dense<0.000000e+00> : vector<8x8xf32>
    %70 = tpu.matmul %67, %68, %cst_44 {dimension_numbers = #tpu.dot_dimension_numbers<[1], [1], [0], [0], [0, 0, 1, 0], [], []>} : vector<8x8xf32>, vector<8x8xf32>, vector<8x8xf32> -> vector<8x8xf32>
    %cst_45 = arith.constant dense<0xFF800000> : vector<8xf32>
    %71 = vector.multi_reduction <maximumf>, %70, %cst_45 [1] : vector<8x8xf32> to vector<8xf32>
    %72 = vector.shape_cast %71 : vector<8xf32> to vector<8x1xf32>
    %73 = vector.broadcast %72 : vector<8x1xf32> to vector<8x8xf32>
    %74 = arith.subf %70, %73 : vector<8x8xf32>
    %75 = math.exp %74 : vector<8x8xf32>
    %cst_46 = arith.constant dense<0.000000e+00> : vector<8xf32>
    %76 = vector.multi_reduction <add>, %75, %cst_46 [1] : vector<8x8xf32> to vector<8xf32>
    %77 = vector.shape_cast %76 : vector<8xf32> to vector<8x1xf32>
    %78 = tpu.reciprocal %77 : vector<8x1xf32> -> vector<8x1xf32>
    %79 = vector.broadcast %78 : vector<8x1xf32> to vector<8x8xf32>
    %80 = arith.mulf %75, %79 : vector<8x8xf32>
    %c0_47 = arith.constant 0 : index
    %c3 = arith.constant 3 : index
    %c0_48 = arith.constant 0 : index
    %c0_49 = arith.constant 0 : index
    %81 = vector.load %arg11[%c0_47, %c3, %c0_48, %c0_49] : memref<1x4x8x8xf32, #tpu.memory_space<vmem>>, vector<1x1x8x8xf32>
    %82 = vector.shape_cast %81 : vector<1x1x8x8xf32> to vector<8x8xf32>
    %83 = vector.shape_cast %80 : vector<8x8xf32> to vector<1x1x8x8xf32>
    tpu.vector_store %arg11[%c0_47, %c3, %c0_48, %c0_49], %83 {strides = array<i32>} : memref<1x4x8x8xf32, #tpu.memory_space<vmem>>, vector<1x1x8x8xf32>,
    %cst_50 = arith.constant dense<0.000000e+00> : vector<8x8xf32>
    %84 = tpu.matmul %80, %69, %cst_50 {dimension_numbers = #tpu.dot_dimension_numbers<[1], [0], [0], [1], [0, 0, 1, 1], [], []>} : vector<8x8xf32>, vector<8x8xf32>, vector<8x8xf32> -> vector<8x8xf32>
    %c0_51 = arith.constant 0 : index
    %c24_52 = arith.constant 24 : index
    %85 = vector.load %arg13[%c0_51, %c24_52] : memref<8x32xf32, #tpu.memory_space<vmem>>, vector<8x8xf32>
    tpu.vector_store %arg13[%c0_51, %c24_52], %84 {strides = array<i32>} : memref<8x32xf32, #tpu.memory_space<vmem>>, vector<8x8xf32>,
    %c0_53 = arith.constant 0 : index
    %c0_54 = arith.constant 0 : index
    %86 = vector.load %arg13[%c0_53, %c0_54] : memref<8x32xf32, #tpu.memory_space<vmem>>, vector<8x32xf32>
    %c0_55 = arith.constant 0 : index
    %c0_56 = arith.constant 0 : index
    %87 = vector.load %arg8[%c0_55, %c0_56] : memref<32x32xf32, #tpu.memory_space<vmem>>, vector<32x32xf32>
    %cst_57 = arith.constant dense<0.000000e+00> : vector<8x32xf32>
    %88 = tpu.matmul %86, %87, %cst_57 {dimension_numbers = #tpu.dot_dimension_numbers<[1], [0], [0], [1], [0, 0, 1, 1], [], []>} : vector<8x32xf32>, vector<32x32xf32>, vector<8x32xf32> -> vector<8x32xf32>
    %c0_58 = arith.constant 0 : index
    %c0_59 = arith.constant 0 : index
    %89 = vector.load %arg9[%c0_58, %c0_59] : memref<1x32xf32, #tpu.memory_space<vmem>>, vector<1x32xf32>
    %90 = vector.broadcast %89 : vector<1x32xf32> to vector<8x32xf32>
    %91 = arith.addf %88, %90 : vector<8x32xf32>
    %c0_60 = arith.constant 0 : index
    %c0_61 = arith.constant 0 : index
    %c0_62 = arith.constant 0 : index
    %92 = vector.load %arg10[%c0_60, %c0_61, %c0_62] : memref<1x8x32xf32, #tpu.memory_space<vmem>>, vector<1x8x32xf32>
    %93 = vector.shape_cast %92 : vector<1x8x32xf32> to vector<8x32xf32>
    %94 = vector.shape_cast %91 : vector<8x32xf32> to vector<1x8x32xf32>
    tpu.vector_store %arg10[%c0_60, %c0_61, %c0_62], %94 {strides = array<i32>} : memref<1x8x32xf32, #tpu.memory_space<vmem>>, vector<1x8x32xf32>,
    return
  }
  func.func @transform_0(%arg0: i32, %arg1: i32) -> (i32, i32, i32) {
    %c0_i32 = arith.constant 0 : i32
    %c0_i32_0 = arith.constant 0 : i32
    return %arg0, %arg1, %c0_i32 : i32, i32, i32
  }
  func.func @transform_1(%arg0: i32, %arg1: i32) -> (i32, i32, i32) {
    %c0_i32 = arith.constant 0 : i32
    %c0_i32_0 = arith.constant 0 : i32
    %c0_i32_1 = arith.constant 0 : i32
    return %arg0, %c0_i32, %c0_i32_0 : i32, i32, i32
  }
  func.func @transform_2(%arg0: i32, %arg1: i32) -> (i32, i32) {
    %c0_i32 = arith.constant 0 : i32
    %c0_i32_0 = arith.constant 0 : i32
    %c0_i32_1 = arith.constant 0 : i32
    return %c0_i32, %c0_i32_0 : i32, i32
  }
  func.func @transform_3(%arg0: i32, %arg1: i32) -> (i32, i32) {
    %c0_i32 = arith.constant 0 : i32
    %c0_i32_0 = arith.constant 0 : i32
    %c0_i32_1 = arith.constant 0 : i32
    return %c0_i32, %c0_i32_0 : i32, i32
  }
  func.func @transform_4(%arg0: i32, %arg1: i32) -> (i32, i32) {
    %c0_i32 = arith.constant 0 : i32
    %c0_i32_0 = arith.constant 0 : i32
    %c0_i32_1 = arith.constant 0 : i32
    return %c0_i32, %c0_i32_0 : i32, i32
  }
  func.func @transform_5(%arg0: i32, %arg1: i32) -> (i32, i32) {
    %c0_i32 = arith.constant 0 : i32
    %c0_i32_0 = arith.constant 0 : i32
    %c0_i32_1 = arith.constant 0 : i32
    return %c0_i32, %c0_i32_0 : i32, i32
  }
  func.func @transform_6(%arg0: i32, %arg1: i32) -> (i32, i32) {
    %c0_i32 = arith.constant 0 : i32
    %c0_i32_0 = arith.constant 0 : i32
    %c0_i32_1 = arith.constant 0 : i32
    return %c0_i32, %c0_i32_0 : i32, i32
  }
  func.func @transform_7(%arg0: i32, %arg1: i32) -> (i32, i32) {
    %c0_i32 = arith.constant 0 : i32
    %c0_i32_0 = arith.constant 0 : i32
    %c0_i32_1 = arith.constant 0 : i32
    return %c0_i32, %c0_i32_0 : i32, i32
  }
  func.func @transform_8(%arg0: i32, %arg1: i32) -> (i32, i32, i32) {
    %c0_i32 = arith.constant 0 : i32
    %c0_i32_0 = arith.constant 0 : i32
    return %arg0, %arg1, %c0_i32 : i32, i32, i32
  }
  func.func @transform_9(%arg0: i32, %arg1: i32) -> (i32, i32, i32, i32) {
    %c0_i32 = arith.constant 0 : i32
    %c0_i32_0 = arith.constant 0 : i32
    %c0_i32_1 = arith.constant 0 : i32
    return %arg0, %c0_i32, %arg1, %c0_i32_0 : i32, i32, i32, i32
  }
}

</mosaic_0001>

<bundles_post_ra>
// kernel: tpu_custom_call.1
= control target key start
LH: loop header
LB: loop body
LE: loop exit
PB: predicated region body
PF: predicated region fallthrough
CT: control target
= control target key end

     0   :  { %s2717_s0 = inlined_call_operand.hbm [shape: f32[2,8,32], index: 0, kind: input, shape index: {}]   ;;  %s2718_s1 = inlined_call_operand.hbm [shape: f32[2,8,32], index: 1, kind: input, shape index: {}]   ;;  %s2719_s2 = inlined_call_operand.hbm [shape: f32[32,32], index: 2, kind: input, shape index: {}]   ;;  %s2720_s3 = inlined_call_operand.vmem [shape: f32[1,32], index: 3, kind: input, shape index: {}]   ;;  %s2721_s4 = inlined_call_operand.hbm [shape: f32[32,64], index: 4, kind: input, shape index: {}]   ;;  %s2722_s5 = inlined_call_operand.vmem [shape: f32[1,64], index: 5, kind: input, shape index: {}]   ;;  %s2723_s6 = inlined_call_operand.hbm [shape: f32[32,32], index: 6, kind: input, shape index: {}]   ;;  %s2724_s7 = inlined_call_operand.vmem [shape: f32[1,32], index: 7, kind: input, shape index: {}]   ;;  %s2725_s8 = inlined_call_operand.hbm [shape: f32[2,8,32], index: 8, kind: output, shape index: {0}]   ;;  %s2726_s9 = inlined_call_operand.hbm [shape: f32[2,4,8,8], index: 9, kind: output, shape index: {1}]  }
   0x1   :  { %2735 = sst [smem:[#allocation24_spill]] %s2719_s2 }
   0x2   :  { %2736 = sst [smem:[#allocation25_spill]] %s2721_s4 }
   0x3   :  { %2737 = sst [smem:[#allocation26_spill]] %s2723_s6 }
   0x4   :  { %2738 = sst [smem:[#allocation27_spill]] %s2724_s7 }
   0x5   :  { %2739 = sst [smem:[#allocation28_spill]] %s2725_s8 }
   0x6   :  { %2740 = sst [smem:[#allocation29_spill]] %s2726_s9 }
   0x7   :  { %15 = vsyncpa [#allocation5], 0 }
   0x8   :  { %17 = vsyncpa [#allocation5 + $0x1], 0 }
   0x9   :  { %18 = vsyncpa [#allocation8], 0 }
   0xa   :  { %20 = vsyncpa [#allocation8 + $0x1], 0 }
   0xb   :  { %21 = vsyncpa [#allocation11], 0 }
   0xc   :  { %22 = vsyncpa [#allocation6], 0 }
   0xd   :  { %24 = vsyncpa [#allocation6 + $0x1], 0 }
   0xe   :  { %25 = vsyncpa [#allocation15], 0 }
   0xf   :  { %27 = vsyncpa [#allocation15 + $0x1], 0  ;;  %s2266_s30 = smov 0   ;;  %s2268_s10 = smov 0  }
  0x10   :  { %s2270_s11 = smov 0   ;;  %s2272_s12 = smov 0  }
  0x11   :  { %s2274_s13 = smov 0   ;;  %s2276_s14 = smov 0  }
  0x12 LB: > { %2741 = sst [smem:[#allocation22_spill]] %s2171_s30  ;;  %s2297_s15 = sadd.s32 4294967295, %s2191_s14   ;;  %s2191_s14 = sphi %s2276_s14, %s33_s14   ;;  %s2187_s13 = sphi %s2274_s13, %s2772_s13   ;;  %s2183_s12 = sphi %s2272_s12, %s2771_s12   ;;  %s2179_s11 = sphi %s2270_s11, %s2770_s11   ;;  %s2175_s10 = sphi %s2268_s10, %s2769_s10   ;;  %s2171_s30 = sphi %s2266_s30, %s2768_s30  }
  0x13   : > { %s1617_s16 = sadd.s32 4294967294, %s2191_s14   ;;  %p67_p0 = scmp.ne.s32.totalorder %s2175_s10, %s2171_s30 }
  0x14   : > { %p2728_p1 = scmp.eq.s32.totalorder %s2297_s15, 0  ;;  %p251_p3 = scmp.eq.s32.totalorder %s1617_s16, 1 }
  0x15   : > { %p1618_p5 = scmp.ge.s32.totalorder %s2191_s14, 1  ;;  %p286_p7 = scmp.lt.s32.totalorder %s2191_s14, 3 }
  0x16   : > { %p2306_p4 = por %p2728_p1, %p67_p0  ;;  %p2311_p6 = por %p251_p3, %p67_p0 }
  0x17   : > { %p2316_p8 = pnand %p1618_p5, %p286_p7  ;;  %s2193_s20 = smov [#allocation9]  }
  0x18   : > { %s2742_s17 = scalar_select %p2306_p4, 1, 0 }
  0x19   : > { %s2743_s18 = scalar_select %p2311_p6, 1, 0 }
  0x1a   : > { %s2745_s19 = scalar_select %p2316_p8, 1, 0 }
  0x1b   : > { %2744 = sst [smem:[#allocation23_spill]] %s2743_s18  ;;  %s298_s21 = sshll.u32 %s2193_s20, 4  ;;  %s2320_s21 = int_to_ptr.vmem [resolvable:$true] %s298_s21 }
  0x1c   : > { %p1806_p9 = pneg %p2316_p8  ;;  %s2194_s23 = smov [#allocation10]  }
  0x1d   : > { %s314_s24 = sshll.u32 %s2194_s23, 4  ;;  %s2195_s25 = smov [#allocation12]   ;;  %s2331_s24 = int_to_ptr.vmem [resolvable:$true] %s314_s24 }
  0x1e   : > { %p2327_p11 = pnand %p1806_p9, %p2728_p1  ;;  %s2333_s26 = sshll.u32 %s2195_s25, 4  ;;  %s331_s26 = int_to_ptr.vmem [resolvable:$true] %s2333_s26 }
  0x1f   : > { %s2747_s2 = sld [smem:[#allocation24_spill]] }
  0x20   : > { %p2343_p13 = pneg %p2327_p11 }
  0x25   : > { %s1921_s29 = scalar_lea.hbm %s2747_s2, 512 }
  0x26   : > { %p1922_p12 = scmp.ne.s32.totalorder %s2747_s2, %s1921_s29  ;;  %p1928_p5 = scmp.lt.u32.totalorder %s1921_s29, %s2747_s2 }
  0x28   : > { %p1924_p0 = pnand %p2343_p13, %p1922_p12 }
  0x2a   : > { %p1925_p3 = pneg %p1924_p0 }
  0x2c   : > { %p1930_p7 = pnand %p1928_p5, %p1925_p3 }
  0x2e   : > { %1933 = shalt.err (!%p1930_p7)
}
  0x2f   : > { %s1934_s27 = scalar_lea.vmem %s2320_s21, 512  ;;  %p1942_p2 = scmp.lt.s32.totalorder %s2320_s21, %s2320_s21 }
  0x30   : > { %p1935_p9 = scmp.ne.s32.totalorder %s2320_s21, %s1934_s27  ;;  %p1943_p6 = scmp.lt.s32.totalorder %s1934_s27, %s1934_s27 }
  0x32   : > { %p1937_p10 = pnand %p1935_p9, %p2343_p13  ;;  %p1944_p12 = por %p1943_p6, %p1942_p2 }
  0x34   : > { %p1938_p1 = pneg %p1937_p10 }
  0x36   : > { %p1945_p0 = pnand %p1944_p12, %p1938_p1 }
  0x38   : > { %1948 = shalt.err (!%p1945_p0)
}
  0x39   : > { %s2196_s28 = smov 128   ;;  %s2197_s29 = smov 8  }
  0x3a   : > { %1809 = dma.hbm_to_vmem [thread:$0]  (!%p2327_p11), %s2747_s2, 512, %s2320_s21, [#allocation8], %s2196_s28, %s2196_s28, %s2197_s29  }
  0x3b   : > { %s2749_s4 = sld [smem:[#allocation25_spill]] }
  0x41   : > { %s1949_s27 = scalar_lea.hbm %s2749_s4, 512 }
  0x42   : > { %p1950_p1 = scmp.ne.s32.totalorder %s2749_s4, %s1949_s27  ;;  %p1956_p10 = scmp.lt.u32.totalorder %s1949_s27, %s2749_s4 }
  0x44   : > { %p1952_p2 = pnand %p1950_p1, %p2343_p13 }
  0x46   : > { %p1953_p6 = pneg %p1952_p2 }
  0x48   : > { %p1958_p3 = pnand %p1956_p10, %p1953_p6 }
  0x4a   : > { %1961 = shalt.err (!%p1958_p3)
}
  0x4b   : > { %s1962_s21 = scalar_lea.vmem %s2331_s24, 512  ;;  %p1970_p12 = scmp.lt.s32.totalorder %s2331_s24, %s2331_s24 }
  0x4c   : > { %p1963_p5 = scmp.ne.s32.totalorder %s2331_s24, %s1962_s21  ;;  %p1971_p0 = scmp.lt.s32.totalorder %s1962_s21, %s1962_s21 }
  0x4e   : > { %p1965_p7 = pnand %p1963_p5, %p2343_p13  ;;  %p1972_p1 = por %p1971_p0, %p1970_p12 }
  0x50   : > { %p1966_p9 = pneg %p1965_p7 }
  0x52   : > { %p1973_p2 = pnand %p1972_p1, %p1966_p9 }
  0x54   : > { %1976 = shalt.err (!%p1973_p2)
}
  0x55   : > { %1812 = dma.hbm_to_vmem [thread:$0]  (!%p2327_p11), %s2749_s4, 512, %s2331_s24, [#allocation11], %s2196_s28, %s2196_s28, %s2197_s29  }
  0x56   : > { %s2750_s6 = sld [smem:[#allocation26_spill]] }
  0x5c   : > { %s1977_s16 = scalar_lea.hbm %s2750_s6, 512 }
  0x5d   : > { %p1978_p6 = scmp.ne.s32.totalorder %s2750_s6, %s1977_s16  ;;  %p1984_p5 = scmp.lt.u32.totalorder %s1977_s16, %s2750_s6 }
  0x5f   : > { %p1980_p10 = pnand %p1978_p6, %p2343_p13 }
  0x61   : > { %p1981_p3 = pneg %p1980_p10 }
  0x63   : > { %p1986_p7 = pnand %p1984_p5, %p1981_p3 }
  0x65   : > { %1989 = shalt.err (!%p1986_p7)
}
  0x66   : > { %s1990_s21 = scalar_lea.vmem %s331_s26, 512  ;;  %p1998_p1 = scmp.lt.s32.totalorder %s331_s26, %s331_s26 }
  0x67   : > { %p1991_p9 = scmp.ne.s32.totalorder %s331_s26, %s1990_s21  ;;  %p1999_p2 = scmp.lt.s32.totalorder %s1990_s21, %s1990_s21 }
  0x69   : > { %p1993_p12 = pnand %p1991_p9, %p2343_p13  ;;  %p2000_p4 = por %p1999_p2, %p1998_p1 }
  0x6b   : > { %p1994_p0 = pneg %p1993_p12 }
  0x6d   : > { %p2001_p8 = pnand %p2000_p4, %p1994_p0 }
  0x6f   : > { %2004 = shalt.err (!%p2001_p8)
}
  0x70   : > { %1815 = dma.hbm_to_vmem [thread:$0]  (!%p2327_p11), %s2750_s6, 512, %s331_s26, [#allocation11], %s2196_s28, %s2196_s28, %s2197_s29  }
  0x71   : > { %s54_s18 = sadd.s32 1, %s2179_s11  ;;  %s45_s22 = sadd.s32 1, %s2187_s13 }
  0x72   : > { %p61_p4 = scmp.ne.s32.totalorder %s2179_s11, %s2175_s10  ;;  %p47_p8 = scmp.ge.s32.totalorder %s45_s22, 2 }
  0x73   : > { %p62_p13 = scmp.eq.s32.totalorder %s2191_s14, 0  ;;  %p2751_p6 = scmp.eq.s32.totalorder %s2297_s15, 1 }
  0x74   : > { %p1833_p3 = scmp.lt.s32.totalorder %s2191_s14, 2  ;;  %s2774_s22 = smov (%p47_p8, %s45_s22), 0 }
  0x75   : > { %p2422_p10 = por %p2751_p6, %p61_p4  ;;  %p63_p5 = por %p62_p13, %p61_p4 }
  0x76   : > { %s347_s9 = sand.u32 1, %s2179_s11   ;;  %s49_s30 = ssub.s32 %s2187_s13, %s2774_s22 }
  0x77   : > { %s2752_s8 = scalar_select %p2422_p10, 1, 0 }
  0x78   : > { %p52_p11 = scmp.eq.s32.totalorder %s49_s30, 0  ;;  %s2432_s26 = sshll.u32 %s347_s9, 3 }
  0x79   : > { %s1624_s28 = sshll.u32 %s2187_s13, 7  ;;  %s351_s25 = scalar_lea.vmem [#allocation4], %s2432_s26 }
  0x7a   : > { %s2436_s29 = scalar_select %p52_p11, %s2179_s11, %s54_s18  }
  0x7b   : > { %s2441_s23 = scalar_lea.hbm %s2717_s0, %s1624_s28  ;;  %s359_s27 = sshll.u32 %s351_s25, 4  ;;  %s2444_s27 = int_to_ptr.vmem [resolvable:$true] %s359_s27 }
  0x7c   : > { %p2448_p7 = pnand %p1833_p3, %p63_p5  ;;  %s2455_s18 = scalar_lea.hbm %s2718_s1, %s1624_s28 }
  0x7d   : > { %s366_s30 = sand.u32 1, %s2191_s14   ;;  %s348_s16 = scalar_lea.sflag [#allocation5], %s347_s9 }
  0x7e   : > { %s2005_s20 = scalar_lea.hbm %s2441_s23, 128  ;;  %p2007_p12 = pneg %p2448_p7 }
  0x7f   : > { %p2006_p9 = scmp.ne.s32.totalorder %s2441_s23, %s2005_s20  ;;  %s2010_s4 = scalar_lea.hbm %s2717_s0, 256 }
  0x80   : > { %p2011_p2 = scmp.lt.u32.totalorder %s2441_s23, %s2717_s0  ;;  %p2012_p4 = scmp.lt.u32.totalorder %s2010_s4, %s2005_s20 }
  0x81   : > { %p2008_p0 = pnand %p2007_p12, %p2006_p9  ;;  %p2014_p13 = scmp.lt.u32.totalorder %s2005_s20, %s2441_s23 }
  0x82   : > { %p2013_p8 = por %p2012_p4, %p2011_p2 }
  0x83   : > { %p2009_p1 = pneg %p2008_p0 }
  0x84   : > { %p2015_p6 = por %p2014_p13, %p2013_p8 }
  0x86   : > { %p2016_p3 = pnand %p2015_p6, %p2009_p1 }
  0x88   : > { %2019 = shalt.err (!%p2016_p3)
}
  0x89   : > { %s2020_s9 = scalar_lea.vmem %s2444_s27, 128  ;;  %s2198_s2 = smov [#allocation4]  }
  0x8a   : > { %p2021_p5 = scmp.ne.s32.totalorder %s2444_s27, %s2020_s9  ;;  %s2025_s28 = sshll.u32 %s2198_s2, 4  ;;  %s2026_s28 = int_to_ptr.vmem [resolvable:$false] %s2025_s28 }
  0x8b   : > { %s2027_s6 = scalar_lea.vmem %s2026_s28, 256  ;;  %p2028_p0 = scmp.lt.s32.totalorder %s2444_s27, %s2026_s28 }
  0x8c   : > { %p2023_p11 = pnand %p2021_p5, %p2007_p12  ;;  %p2029_p2 = scmp.lt.s32.totalorder %s2027_s6, %s2020_s9 }
  0x8e   : > { %p2024_p9 = pneg %p2023_p11  ;;  %p2030_p4 = por %p2029_p2, %p2028_p0 }
  0x90   : > { %p2031_p8 = pnand %p2030_p4, %p2024_p9 }
  0x92   : > { %2034 = shalt.err (!%p2031_p8)
}
  0x93   : > { %1819 = dma.hbm_to_vmem [thread:$0]  (!%p2448_p7), %s2441_s23, 128, %s2444_s27, %s348_s16  }
  0x94   : > { %s370_s4 = scalar_lea.vmem [#allocation7], %s2432_s26  ;;  %s367_s20 = scalar_lea.sflag [#allocation8], %s366_s30 }
  0x95   : > { %s377_s7 = sshll.u32 %s370_s4, 4  ;;  %s2035_s25 = scalar_lea.hbm %s2455_s18, 128  ;;  %s378_s7 = int_to_ptr.vmem [resolvable:$true] %s377_s7 }
  0x96   : > { %p2036_p1 = scmp.ne.s32.totalorder %s2455_s18, %s2035_s25  ;;  %s2040_s2 = scalar_lea.hbm %s2718_s1, 256 }
  0x97   : > { %p2041_p3 = scmp.lt.u32.totalorder %s2455_s18, %s2718_s1  ;;  %p2042_p5 = scmp.lt.u32.totalorder %s2040_s2, %s2035_s25 }
  0x98   : > { %p2038_p13 = pnand %p2036_p1, %p2007_p12  ;;  %p2044_p9 = scmp.lt.u32.totalorder %s2035_s25, %s2455_s18 }
  0x99   : > { %p2043_p11 = por %p2042_p5, %p2041_p3 }
  0x9a   : > { %p2039_p6 = pneg %p2038_p13 }
  0x9b   : > { %p2045_p0 = por %p2044_p9, %p2043_p11 }
  0x9d   : > { %p2046_p2 = pnand %p2045_p0, %p2039_p6 }
  0x9f   : > { %2049 = shalt.err (!%p2046_p2)
}
  0xa0   : > { %s2050_s26 = scalar_lea.vmem %s378_s7, 128  ;;  %s2199_s23 = smov [#allocation7]  }
  0xa1   : > { %p2051_p4 = scmp.ne.s32.totalorder %s378_s7, %s2050_s26  ;;  %s2055_s27 = sshll.u32 %s2199_s23, 4  ;;  %s2056_s27 = int_to_ptr.vmem [resolvable:$false] %s2055_s27 }
  0xa2   : > { %s2057_s30 = scalar_lea.vmem %s2056_s27, 256  ;;  %p2058_p13 = scmp.lt.s32.totalorder %s378_s7, %s2056_s27 }
  0xa3   : > { %p2053_p8 = pnand %p2051_p4, %p2007_p12  ;;  %p2059_p10 = scmp.lt.s32.totalorder %s2057_s30, %s2050_s26 }
  0xa5   : > { %p2054_p1 = pneg %p2053_p8  ;;  %p2060_p3 = por %p2059_p10, %p2058_p13 }
  0xa7   : > { %p2061_p5 = pnand %p2060_p3, %p2054_p1 }
  0xa9   : > { %2064 = shalt.err (!%p2061_p5)
}
  0xaa   : > { %1822 = dma.hbm_to_vmem [thread:$0]  (!%p2448_p7), %s2455_s18, 128, %s378_s7, %s367_s20  }
  0xab   : > { %p2754_p6 = scmp.ne.s32.totalorder %s2745_s19, 0 }
  0xac   : > { %s2508_s16 = sand.u32 (!%p2754_p6), 1, %s2175_s10   ;;  %p2755_p10 = scmp.ne.s32.totalorder (!%p2754_p6), %s2742_s17, 0 }
  0xad   : > { %386 = sbr.rel (%p2754_p6) target bundleno = 1639 (0x667), region = 52  ;;  %s2511_s4 = sshll.u32 (!%p2754_p6), %s2508_s16, 3 }
  0xae   : > { %s389_s25 = scalar_lea.sflag (!%p2754_p6), [#allocation5], %s2508_s16  ;;  %s392_s24 = scalar_lea.vmem (!%p2754_p6), [#allocation4], %s2511_s4 }
  0xb4   : > { %2146 = dma.done.wait (%p2755_p10), %s389_s25, 128  }
  0xb5   : > { %2148 = vsyncadd (%p2755_p10), %s389_s25, 4294967168  ;;  %s397_s19 = sand.u32 1, %s2297_s15   ;;  %s401_s18 = scalar_lea.vmem [#allocation7], %s2511_s4 }
  0xb6   : > { %s398_s21 = scalar_lea.sflag [#allocation8], %s397_s19 }
  0xb7   : > { %2150 = dma.done.wait (%p2755_p10), %s398_s21, 128  }
  0xb8   : > { %2152 = vsyncadd (%p2755_p10), %s398_s21, 4294967168  ;;  %p2756_p7 = scmp.eq.s32.totalorder %s2297_s15, 0 }
  0xba   : > { %2154 = dma.done.wait (%p2756_p7), [#allocation8], 512   ;;  %p2757_p12 = pmov %p2756_p7 }
  0xbb   : > { %p2758_p11 = pmov %p2756_p7 }
  0xbc   : > { %2156 = vsyncadd (%p2757_p12), [#allocation8], 4294966784 }
  0xbd   : > { %2158 = dma.done.wait (%p2758_p11), [#allocation11], 1024   ;;  %p2759_p9 = pmov %p2756_p7 }
  0xbe   : > { %v2200_v0 = vmov 0.0|0.0   ;;  %vm2201_vm0 = vmmov 0   ;;  %v2202_v1 = vmov 0.0   ;;  %v463_v2 = vld [vmem:[#allocation10] sm:$0xff]  ;;  %v464_v3 = vld [vmem:[#allocation10 + $0x8] sm:$0xff]  ;;  %v465_v4 = vld [vmem:[#allocation10 + $0x10] sm:$0xff] }
  0xbf   : > { %2160 = vsyncadd (%p2759_p9), [#allocation11], 4294966272  ;;  %1768 = vmatprep.subr.bf16.mxu0 %v2200_v0  ;;  %1703 = vmatprep.mubr.msk.f32.mxu0 %vm2201_vm0, %v2202_v1  ;;  %v1769_v5 = vpack.c.bf16 %v464_v3, %v463_v2  ;;  %v466_v6 = vld [vmem:[#allocation10 + $0x18] sm:$0xff]  ;;  %v551_v7 = vld [vmem:[#allocation9] sm:$0xff]  ;;  %vm474_vm1 = vcmask 261120   ;;  %vm548_vm2 = vcmask 523264  }
  0xc0   : > { %1774 = vmatprep.subr.bf16.mxu1 %v2200_v0  ;;  %1714 = vmatprep.mubr.msk.f32.mxu1 %vm2201_vm0, %v2202_v1  ;;  %v552_v8 = vld [vmem:[#allocation9 + $0x8] sm:$0xff]  ;;  %v553_v9 = vld [vmem:[#allocation9 + $0x10] sm:$0xff]  ;;  %v554_v10 = vld [vmem:[#allocation9 + $0x18] sm:$0xff]  ;;  %v1772_v11 = vpack.c.bf16 %v466_v6, %v465_v4  ;;  %vm637_vm3 = vcmask 64512   ;;  %s2203_s9 = smov 112   ;;  %s2204_s2 = smov 120  }
  0xc1   : > { %1770 = vmatpush3.bf16.msra.mxu0 %v1769_v5  ;;  %v1775_v12 = vpack.c.bf16 %v552_v8, %v551_v7  ;;  %v1778_v13 = vpack.c.bf16 %v554_v10, %v553_v9  ;;  %v462_v14 = vld [vmem:[%s401_s18] sm:$0xff]  ;;  %v550_v15 = vld [vmem:[%s392_s24] sm:$0xff]  ;;  %s2205_s28 = smov 104   ;;  %s2206_s6 = smov 96   ;;  %vm976_vm4 = vcmask 130112   ;;  %vm1151_vm5 = vcmask 195712  }
  0xc2   : > { %1771 = vmatprep.subr.bf16.mxu0 %v2200_v0  ;;  %v1635_v16 = vld [vmem:[%s2722_s5] ss:$0 sm:$0xff]  ;;  %s2207_s26 = smov 80   ;;  %s2208_s23 = smov 72   ;;  %vm1326_vm6 = vcmask 261312  }
  0xc3   : > { %1776 = vmatpush3.bf16.msra.mxu1 %v1775_v12  ;;  %v1637_v22 = vld [vmem:[%s2720_s3] ss:$0 sm:$0xff]  ;;  %s2209_s27 = smov 88   ;;  %s1634_s30 = sshll.u32 %s2508_s16, 5 }
  0xc4   : > { %1777 = vmatprep.subr.bf16.mxu1 %v2200_v0  ;;  %s2599_s25 = scalar_lea.vmem [#allocation14], %s1634_s30  ;;  %s2210_s24 = smov 8  }
  0xc5   : > { %1773 = vmatpush3.bf16.msra.mxu0 %v1772_v11  ;;  %s2211_s19 = smov 16   ;;  %s2212_s21 = smov 24  }
  0xc6   : > { %1727 = vmatprep.subr.mxu0 %v2202_v1  ;;  %s1663_s18 = sshll.u32 %s2183_s12, 9  ;;  %s1448_s15 = sshll.u32 %s2599_s25, 4  ;;  %s2632_s15 = int_to_ptr.vmem [resolvable:$true] %s1448_s15 }
  0xc7   : > { %1779 = vmatpush3.bf16.msra.mxu1 %v1778_v13  ;;  %s2760_s20 = sld [smem:[#allocation29_spill]]  ;;  %p2761_p2 = scmp.ne.s32.totalorder %s2752_s8, 0 }
  0xc8   : > { %1704 = vmatmul.mubr.msk.f32.vlgmr.msra.gmra.mrb[0].mxu0 %vm474_vm1, %v462_v14  ;;  %1717 = vmatprep.subr.mxu1 %v2202_v1 }
  0xc9   : > { %1729 = vmatprep.mubr.msk.f32.mxu0 %vm2201_vm0, %v2202_v1 }
  0xca   : > { %1715 = vmatmul.mubr.msk.f32.vlgmr.msra.gmra.mrb[0].mxu1 %vm474_vm1, %v550_v15 }
  0xcb   : > { %1719 = vmatprep.mubr.msk.f32.mxu1 %vm2201_vm0, %v2202_v1 }
 0x19b   : > { %v544_v17 = vpop.f32.mrb[0].mxu0 }
 0x19c   : > { %v545_v18 = vadd.f32 %v1635_v16, %v544_v17  ;;  %v1705_v19 = vpop.f32.mrb[1].mxu0 }
 0x19d   : > { %v632_v20 = vpop.f32.mrb[0].mxu1  ;;  %v1329_v19 = vld [vmem:[#allocation12] sm:$0xff] }
 0x19e   : > { %549 = vst.msk [vmem:[#allocation2] sm:$0xff] %vm548_vm2, %v545_v18  ;;  %v1716_v21 = vpop.f32.mrb[1].mxu1  ;;  %v633_v24 = vadd.f32 %v1637_v22, %v632_v20  ;;  %v1330_v20 = vld [vmem:[#allocation12 + $0x8] sm:$0xff]  ;;  %v1331_v22 = vld [vmem:[#allocation12 + $0x10] sm:$0xff] }
 0x19f   : > { %v1781_v21 = vpack.c.bf16 %v1330_v20, %v1329_v19 }
 0x1a5   : > { %v2559_v23 = vld [vmem:[#allocation2] sm:$0xff] }
 0x1a6   : > { %982 = vrot.lane.b32.xlu1 %v2559_v23, %s2203_s9  ;;  %807 = vrot.lane.b32.xlu0 %v2559_v23, %s2204_s2 }
 0x1a7   : > { %1718 = vmatpush3.xpose.msk.msra.mxu1 %vm637_vm3, %v2559_v23 }
 0x1a8   : > { %1722 = vmatprep.subr.mxu1 %v2202_v1 }
 0x1aa   : > { %1720 = vmatmul.mubr.msk.f32.vlgmr.msra.gmra.mrb[2].mxu1 %vm637_vm3, %v633_v24  ;;  %979 = vrot.lane.b32.xlu1 %v633_v24, %s2203_s9  ;;  %s2630_s9 = scalar_lea.hbm %s2760_s20, %s1663_s18 }
 0x1ab   : > { %804 = vrot.lane.b32.xlu0 %v633_v24, %s2204_s2  ;;  %1724 = vmatprep.mubr.msk.f32.mxu1 %vm2201_vm0, %v2202_v1  ;;  %s1420_s2 = scalar_lea.sflag [#allocation15], %s2508_s16 }
 0x1ae   : > { %1154 = vrot.lane.b32.xlu1 %v633_v24, %s2205_s28 }
 0x1af   : > { %1157 = vrot.lane.b32.xlu0 %v2559_v23, %s2205_s28  ;;  %s2065_s28 = scalar_lea.vmem %s2632_s15, 512 }
 0x1b0   : > { %p2066_p0 = scmp.ne.s32.totalorder %s2632_s15, %s2065_s28 }
 0x1b2   : > { %p2067_p4 = pnand %p2066_p0, %p2761_p2 }
 0x1b4   : > { %p2068_p8 = pneg %p2067_p4 }
 0x218   : > { %v808_v25 = vpop.permute.xlu0 %807  ;;  %v983_v26 = vpop.permute.xlu1 %982 }
 0x219   : > { %1728 = vmatpush3.xpose.msk.msra.mxu0 %vm637_vm3, %v808_v25 }
 0x21a   : > { %1737 = vmatprep.subr.mxu0 %v2202_v1 }
 0x21c   : > { %v980_v28 = vpop.permute.xlu1 %979 }
 0x21d   : > { %v805_v27 = vpop.permute.xlu0 %804 }
 0x21e   : > { %1730 = vmatmul.mubr.msk.f32.vlgmr.msra.gmra.mrb[2].mxu0 %vm637_vm3, %v805_v27 }
 0x21f   : > { %1738 = vmatpush3.xpose.msk.msra.mxu0 %vm637_vm3, %v983_v26  ;;  %1739 = vmatprep.mubr.msk.f32.mxu0 %vm2201_vm0, %v2202_v1 }
 0x220   : > { %1747 = vmatprep.subr.mxu0 %v2202_v1  ;;  %v1155_v30 = vpop.permute.xlu1 %1154 }
 0x221   : > { %v1158_v29 = vpop.permute.xlu0 %1157 }
 0x222   : > { %1740 = vmatmul.mubr.msk.f32.vlgmr.msra.gmra.mrb[4].mxu0 %vm637_vm3, %v980_v28 }
 0x223   : > { %1748 = vmatpush3.xpose.msk.msra.mxu0 %vm637_vm3, %v1158_v29  ;;  %1749 = vmatprep.mubr.msk.f32.mxu0 %vm2201_vm0, %v2202_v1 }
 0x224   : > { %1780 = vmatprep.subr.bf16.mxu0 %v2200_v0 }
 0x226   : > { %1750 = vmatmul.mubr.msk.f32.vlgmr.msra.gmra.mrb[6].mxu0 %vm637_vm3, %v1155_v30 }
 0x227   : > { %1765 = vmatprep.mubr.msk.f32.mxu0 %vm2201_vm0, %v2202_v1  ;;  %1782 = vmatpush3.bf16.msra.mxu0 %v1781_v21 }
 0x228   : > { %1783 = vmatprep.subr.bf16.mxu0 %v2200_v0 }
 0x27d   : > { %v710_v31 = vpop.f32.mrb[2].mxu1 }
 0x27e   : > { %v1721_v32 = vpop.f32.mrb[3].mxu1  ;;  %v714_v33 = vsel %vm637_vm3, %v710_v31, -inf }
 0x27f   : > { %715 = vmax.xlane.f32.xlu0 %v714_v33 }
 0x2f1   : > { %v879_v34 = vpop.f32.mrb[2].mxu0 }
 0x2f2   : > { %v1731_v35 = vpop.f32.mrb[3].mxu0  ;;  %v883_v36 = vsel %vm637_vm3, %v879_v34, -inf }
 0x2f3   : > { %884 = vmax.xlane.f32.xlu1 %v883_v36 }
 0x2f5   : > { %v1054_v37 = vpop.f32.mrb[4].mxu0 }
 0x2f6   : > { %v1741_v38 = vpop.f32.mrb[5].mxu0  ;;  %v1058_v39 = vsel %vm637_vm3, %v1054_v37, -inf }
 0x2f7   : > { %1059 = vmax.xlane.f32.xlu0 %v1058_v39 }
 0x2f9   : > { %v1229_v40 = vpop.f32.mrb[6].mxu0 }
 0x2fa   : > { %v1751_v41 = vpop.f32.mrb[7].mxu0  ;;  %v1233_v42 = vsel %vm637_vm3, %v1229_v40, -inf }
 0x2fb   : > { %1234 = vmax.xlane.f32.xlu0 %v1233_v42 }
 0x304   : > { %726 = vrot.lane.b32.xlu1 %v2559_v23, %s2206_s6  ;;  %s2213_s6 = smov [#allocation14]  }
 0x30c   : > { %v716_v43 = vpop.xlane.xlu0 %715 }
 0x30d   : > { %v717_v44 = vsub.f32 %v710_v31, %v716_v43 }
 0x30f   : > { %v718_v45 = vmul.f32 1.442695, %v717_v44 }
 0x311   : > { %1905 = vpow2.f32 %v718_v45 }
 0x31b   : > { %v1906_v46 = vpop.eup %1905 }
 0x31c   : > { %v720_v47 = vsel %vm637_vm3, %v1906_v46, 0.0 }
 0x328   : > { %721 = vadd.xlane.f32.xlu1 %v720_v47 }
 0x380   : > { %v885_v48 = vpop.xlane.xlu1 %884 }
 0x381   : > { %v886_v49 = vsub.f32 %v879_v34, %v885_v48 }
 0x383   : > { %v887_v50 = vmul.f32 1.442695, %v886_v49 }
 0x384   : > { %v727_v51 = vpop.permute.xlu1 %726  ;;  %v1060_v52 = vpop.xlane.xlu0 %1059 }
 0x385   : > { %1907 = vpow2.f32 %v887_v50  ;;  %v1061_v53 = vsub.f32 %v1054_v37, %v1060_v52  ;;  %1723 = vmatpush3.msra.mxu1 %v727_v51 }
 0x386   : > { %1732 = vmatprep.subr.mxu1 %v2202_v1 }
 0x387   : > { %v1062_v54 = vmul.f32 1.442695, %v1061_v53 }
 0x388   : > { %v1235_v55 = vpop.xlane.xlu0 %1234 }
 0x389   : > { %1909 = vpow2.f32 %v1062_v54  ;;  %v1236_v56 = vsub.f32 %v1229_v40, %v1235_v55 }
 0x38b   : > { %v1237_v57 = vmul.f32 1.442695, %v1236_v56 }
 0x38d   : > { %1911 = vpow2.f32 %v1237_v57 }
 0x38f   : > { %v1908_v58 = vpop.eup %1907 }
 0x390   : > { %v889_v59 = vsel %vm637_vm3, %v1908_v58, 0.0 }
 0x391   : > { %890 = vadd.xlane.f32.xlu0 %v889_v59 }
 0x393   : > { %v1910_v60 = vpop.eup %1909 }
 0x394   : > { %v1064_v61 = vsel %vm637_vm3, %v1910_v60, 0.0 }
 0x395   : > { %1065 = vadd.xlane.f32.xlu1 %v1064_v61 }
 0x397   : > { %v1912_v62 = vpop.eup %1911 }
 0x398   : > { %v1239_v63 = vsel %vm637_vm3, %v1912_v62, 0.0 }
 0x399   : > { %1240 = vadd.xlane.f32.xlu0 %v1239_v63 }
 0x3a6   : > { %1071 = vrot.lane.b32.xlu1 %v2559_v23, %s2207_s26  ;;  %s2069_s26 = sshll.u32 %s2213_s6, 4  ;;  %s2070_s26 = int_to_ptr.vmem [resolvable:$false] %s2069_s26 }
 0x3a7   : > { %p2072_p1 = scmp.lt.s32.totalorder %s2632_s15, %s2070_s26 }
 0x3aa   : > { %1246 = vrot.lane.b32.xlu1 %v2559_v23, %s2208_s23  ;;  %s2071_s23 = scalar_lea.vmem %s2070_s26, 1024 }
 0x3ab   : > { %p2073_p13 = scmp.lt.s32.totalorder %s2071_s23, %s2065_s28 }
 0x3ad   : > { %p2074_p3 = por %p2073_p13, %p2072_p1 }
 0x3af   : > { %896 = vrot.lane.b32.xlu0 %v2559_v23, %s2209_s27  ;;  %v1332_v23 = vld [vmem:[#allocation12 + $0x18] sm:$0xff]  ;;  %p2075_p5 = pnand %p2074_p3, %p2068_p8 }
 0x3b0   : > { %v1784_v24 = vpack.c.bf16 %v1332_v23, %v1331_v22 }
 0x3b2   : > { %1785 = vmatpush3.bf16.msra.mxu0 %v1784_v24 }
 0x3b5   : > { %v722_v2 = vpop.xlane.xlu1 %721 }
 0x3b6   : > { %1913 = vrcp.f32 %v722_v2 }
 0x3c0   : > { %v1914_v3 = vpop.eup %1913 }
 0x3c1   : > { %v724_v4 = vmul.f32 %v1914_v3, %v1906_v46 }
 0x3c3   : > { %725 = vst.msk [vmem:[%s2599_s25] sm:$0xff] %vm637_vm3, %v724_v4  ;;  %1725 = vmatmul.mubr.msk.f32.vlgmr.msra.gmra.mrb[4].mxu1 %vm637_vm3, %v724_v4 }
 0x3c4   : > { %1734 = vmatprep.mubr.msk.f32.mxu1 %vm2201_vm0, %v2202_v1 }
 0x41e   : > { %v891_v5 = vpop.xlane.xlu0 %890 }
 0x41f   : > { %1915 = vrcp.f32 %v891_v5 }
 0x422   : > { %v1066_v6 = vpop.xlane.xlu1 %1065 }
 0x423   : > { %1917 = vrcp.f32 %v1066_v6 }
 0x426   : > { %v1241_v7 = vpop.xlane.xlu0 %1240  ;;  %v1072_v10 = vpop.permute.xlu1 %1071 }
 0x427   : > { %1919 = vrcp.f32 %v1241_v7 }
 0x429   : > { %v1916_v8 = vpop.eup %1915 }
 0x42a   : > { %v893_v9 = vmul.f32 %v1916_v8, %v1908_v58  ;;  %v897_v11 = vpop.permute.xlu0 %896  ;;  %v1247_v14 = vpop.permute.xlu1 %1246 }
 0x42b   : > { %1733 = vmatpush3.msra.mxu1 %v897_v11 }
 0x42c   : > { %1644 = vst.msk [vmem:[%s2599_s25 + $0x8] sm:$0xff] %vm637_vm3, %v893_v9  ;;  %1735 = vmatmul.mubr.msk.f32.vlgmr.msra.gmra.mrb[6].mxu1 %vm637_vm3, %v893_v9  ;;  %1742 = vmatprep.subr.mxu1 %v2202_v1 }
 0x42d   : > { %v1918_v12 = vpop.eup %1917  ;;  %1743 = vmatpush3.msra.mxu1 %v1072_v10  ;;  %1744 = vmatprep.mubr.msk.f32.mxu1 %vm2201_vm0, %v2202_v1 }
 0x42e   : > { %v1068_v13 = vmul.f32 %v1918_v12, %v1910_v60  ;;  %1752 = vmatprep.subr.mxu1 %v2202_v1 }
 0x430   : > { %1648 = vst.msk [vmem:[%s2599_s25 + $0x10] sm:$0xff] %vm637_vm3, %v1068_v13  ;;  %1745 = vmatmul.mubr.msk.f32.vlgmr.msra.gmra.mrb[8].mxu1 %vm637_vm3, %v1068_v13 }
 0x431   : > { %v1920_v15 = vpop.eup %1919  ;;  %1753 = vmatpush3.msra.mxu1 %v1247_v14  ;;  %1754 = vmatprep.mubr.msk.f32.mxu1 %vm2201_vm0, %v2202_v1 }
 0x432   : > { %v1243_v16 = vmul.f32 %v1920_v15, %v1912_v62 }
 0x434   : > { %1652 = vst.msk [vmem:[%s2599_s25 + $0x18] sm:$0xff] %vm637_vm3, %v1243_v16  ;;  %1755 = vmatmul.mubr.msk.f32.vlgmr.msra.gmra.mrb[10].mxu1 %vm637_vm3, %v1243_v16 }
 0x496   : > { %v798_v17 = vpop.f32.mrb[4].mxu1 }
 0x497   : > { %802 = vst.msk [vmem:[#allocation3] sm:$0xff] %vm637_vm3, %v798_v17  ;;  %v1726_v18 = vpop.f32.mrb[5].mxu1 }
 0x4ff   : > { %v968_v25 = vpop.f32.mrb[6].mxu1 }
 0x500   : > { %973 = vrot.lane.b32.xlu0 %v968_v25, %s2210_s24  ;;  %v1736_v1 = vpop.f32.mrb[7].mxu1 }
 0x503   : > { %v1143_v26 = vpop.f32.mrb[8].mxu1 }
 0x504   : > { %1148 = vrot.lane.b32.xlu1 %v1143_v26, %s2211_s19  ;;  %v1746_v27 = vpop.f32.mrb[9].mxu1 }
 0x507   : > { %v1318_v28 = vpop.f32.mrb[10].mxu1 }
 0x508   : > { %1323 = vrot.lane.b32.xlu0 %v1318_v28, %s2212_s21  ;;  %v1756_v29 = vpop.f32.mrb[11].mxu1 }
 0x572   : > { %v974_v30 = vpop.permute.xlu0 %973 }
 0x573   : > { %977 = vst.msk [vmem:[#allocation3] sm:$0xff] %vm976_vm4, %v974_v30 }
 0x576   : > { %v1149_v0 = vpop.permute.xlu1 %1148 }
 0x577   : > { %1152 = vst.msk [vmem:[#allocation3] sm:$0xff] %vm1151_vm5, %v1149_v0 }
 0x57a   : > { %v1324_v31 = vpop.permute.xlu0 %1323 }
 0x57b   : > { %1327 = vst.msk [vmem:[#allocation3] sm:$0xff] %vm1326_vm6, %v1324_v31 }
 0x582   : > { %v1328_v32 = vld [vmem:[#allocation3] sm:$0xff] }
 0x583   : > { %1766 = vmatmul.mubr.msk.f32.vlgmr.msra.gmra.mrb[8].mxu0 %vm474_vm1, %v1328_v32 }
 0x584   : > { %2078 = shalt.err (!%p2075_p5)
}
 0x585   : > { %s2079_s27 = scalar_lea.hbm %s2630_s9, 512  ;;  %s2083_s19 = scalar_lea.hbm %s2760_s20, 1024 }
 0x586   : > { %p2080_p6 = scmp.ne.s32.totalorder %s2630_s9, %s2079_s27  ;;  %p2084_p12 = scmp.lt.u32.totalorder %s2630_s9, %s2760_s20 }
 0x587   : > { %p2085_p11 = scmp.lt.u32.totalorder %s2083_s19, %s2079_s27  ;;  %p2087_p0 = scmp.lt.u32.totalorder %s2079_s27, %s2630_s9 }
 0x588   : > { %p2081_p10 = pnand %p2080_p6, %p2761_p2 }
 0x589   : > { %p2086_p9 = por %p2085_p11, %p2084_p12 }
 0x58a   : > { %p2082_p7 = pneg %p2081_p10 }
 0x58b   : > { %p2088_p4 = por %p2087_p0, %p2086_p9 }
 0x58d   : > { %p2089_p8 = pnand %p2088_p4, %p2082_p7 }
 0x58f   : > { %2092 = shalt.err (!%p2089_p8)
}
 0x590   : > { %s2214_s17 = smov 128   ;;  %s2762_s6 = sld [smem:[#allocation27_spill]] }
 0x591   : > { %1803 = dma.vmem_to_hbm [thread:$0]  (%p2761_p2), %s2632_s15, 512, %s2630_s9, %s1420_s2, %s2214_s17, %s2214_s17, %s2210_s24  }
 0x592   : > { %s1658_s26 = sshll.u32 %s2183_s12, 7  ;;  %s450_s23 = scalar_lea.vmem [#allocation13], %s2511_s4 }
 0x593   : > { %s1434_s27 = sshll.u32 %s450_s23, 4  ;;  %s2763_s19 = sld [smem:[#allocation28_spill]]  ;;  %s2669_s27 = int_to_ptr.vmem [resolvable:$true] %s1434_s27 }
 0x594   : > { %s1415_s24 = scalar_lea.sflag [#allocation6], %s2508_s16  ;;  %s2093_s15 = scalar_lea.vmem %s2669_s27, 128 }
 0x595   : > { %p2094_p1 = scmp.ne.s32.totalorder %s2669_s27, %s2093_s15  ;;  %s2215_s12 = smov [#allocation13]  }
 0x596   : > { %v1654_v33 = vld [vmem:[%s2762_s6] ss:$0 sm:$0xff]  ;;  %s2097_s4 = sshll.u32 %s2215_s12, 4  ;;  %s2098_s4 = int_to_ptr.vmem [resolvable:$false] %s2097_s4 }
 0x597   : > { %p2095_p13 = pnand %p2094_p1, %p2761_p2  ;;  %s2099_s9 = scalar_lea.vmem %s2098_s4, 256 }
 0x598   : > { %p2100_p5 = scmp.lt.s32.totalorder %s2669_s27, %s2098_s4  ;;  %p2101_p6 = scmp.lt.s32.totalorder %s2099_s9, %s2093_s15 }
 0x599   : > { %s2667_s21 = scalar_lea.hbm %s2763_s19, %s1658_s26  ;;  %p2096_p3 = pneg %p2095_p13 }
 0x59a   : > { %p2102_p10 = por %p2101_p6, %p2100_p5 }
 0x59c   : > { %p2103_p7 = pnand %p2102_p10, %p2096_p3 }
 0x656   : > { %v1409_v34 = vpop.f32.mrb[8].mxu0 }
 0x657   : > { %v1410_v35 = vadd.f32 %v1654_v33, %v1409_v34  ;;  %v1767_v36 = vpop.f32.mrb[9].mxu0 }
 0x659   : > { %1413 = vst.msk [vmem:[%s450_s23] sm:$0xff] %vm474_vm1, %v1410_v35 }
 0x65a   : > { %2106 = shalt.err (!%p2103_p7)
}
 0x65b   : > { %s2107_s16 = scalar_lea.hbm %s2667_s21, 128  ;;  %s2111_s17 = scalar_lea.hbm %s2763_s19, 256 }
 0x65c   : > { %p2108_p12 = scmp.ne.s32.totalorder %s2667_s21, %s2107_s16  ;;  %p2112_p0 = scmp.lt.u32.totalorder %s2667_s21, %s2763_s19 }
 0x65d   : > { %p2113_p4 = scmp.lt.u32.totalorder %s2111_s17, %s2107_s16  ;;  %p2115_p1 = scmp.lt.u32.totalorder %s2107_s16, %s2667_s21 }
 0x65e   : > { %p2109_p11 = pnand %p2108_p12, %p2761_p2 }
 0x65f   : > { %p2114_p8 = por %p2113_p4, %p2112_p0 }
 0x660   : > { %p2110_p9 = pneg %p2109_p11 }
 0x661   : > { %p2116_p13 = por %p2115_p1, %p2114_p8 }
 0x663   : > { %p2117_p3 = pnand %p2116_p13, %p2110_p9 }
 0x665   : > { %2120 = shalt.err (!%p2117_p3)
}
 0x666   : > { %1802 = dma.vmem_to_hbm [thread:$0]  (%p2761_p2), %s2669_s27, 128, %s2667_s21, %s1415_s24  }
 0x667 PF: > { %s2764_s6 = sld [smem:[#allocation22_spill]]  ;;  %s2765_s26 = sld [smem:[#allocation23_spill]] }
 0x668   : > { %p2767_p6 = scmp.ge.s32.totalorder %s2191_s14, 2 }
 0x66d   : > { %s1463_s23 = sand.u32 1, %s2764_s6   ;;  %p2766_p5 = scmp.ne.s32.totalorder %s2765_s26, 0 }
 0x66e   : > { %s1464_s30 = scalar_lea.sflag [#allocation6], %s1463_s23 }
 0x66f   : > { %p1824_p10 = pnand %p2767_p6, %p2766_p5 }
 0x671   : > { %2162 = dma.done.wait (!%p1824_p10), %s1464_s30, 128  }
 0x672   : > { %2164 = vsyncadd (!%p1824_p10), %s1464_s30, 4294967168  ;;  %s1473_s25 = scalar_lea.sflag [#allocation15], %s1463_s23 }
 0x673   : > { %2166 = dma.done.wait (!%p1824_p10), %s1473_s25, 512  }
 0x674   : > { %2168 = vsyncadd (!%p1824_p10), %s1473_s25, 4294966784  ;;  %s33_s14 = sadd.s32 1, %s2191_s14   ;;  %s2768_s30 = smov %s2175_s10 }
 0x675   : > { %p30_p7 = scmp.ge.s32.totalorder %s33_s14, 4   ;;  %s2769_s10 = smov %s2179_s11 }
 0x676   : > { %s2770_s11 = smov %s2436_s29  ;;  %s2771_s12 = smov %s2187_s13 }
 0x677   : > { %s2772_s13 = smov %s2774_s22  ;;  %32 = sbr.rel (!%p30_p7) target bundleno = 18 (0x12), region = 146 }
 0x67e   :  { %1478 = vsyncpa [#allocation5], 1 }
 0x67f   :  { %1480 = vsyncpa [#allocation5 + $0x1], 1 }
 0x680   :  { %1481 = vsyncpa [#allocation8], 1 }
 0x681   :  { %1483 = vsyncpa [#allocation8 + $0x1], 1 }
 0x682   :  { %1484 = vsyncpa [#allocation11], 1 }
 0x683   :  { %1485 = vsyncpa [#allocation6], 1 }
 0x684   :  { %1487 = vsyncpa [#allocation6 + $0x1], 1 }
 0x685   :  { %1488 = vsyncpa [#allocation15], 1 }
 0x686   :  { %1490 = vsyncpa [#allocation15 + $0x1], 1 }

</bundles_post_ra>
